<compile_context>
chip_gen: v7x
topology: tpu7x:2x2x1
jax: 0.10.0
libtpu: 0.0.40
codegen_flags: <defaults>
</compile_context>

<pallas_src>
import functools

import numpy as np
import jax
import jax.numpy as jnp
from jax import lax
from jax.experimental import pallas as pl
from jax.experimental.pallas import tpu as pltpu

_EPS = 1e-5                                      # torch.nn.InstanceNorm1d default eps
_SEGMENTS = ((0, 3), (3, 6), (6, 11), (11, 16))  # no / pt / remaining_pt / ttd_slack
_REST_START = 16
_HIGHEST = lax.Precision.HIGHEST


def _round_up(x, m):
    return ((x + m - 1) // m) * m


def _use_bf16_tanh():
    """bf16 EUP tanh on v6e / v7x; keep f32 on v5e (no bf16 VPU/EUP) and unknowns."""
    try:
        kind = jax.devices()[0].device_kind.lower()
    except Exception:
        return False
    return any(tag in kind for tag in ("v6", "v7", "7x"))


def _norm_constants(feat):
    """S: [F, n_seg] per-segment 1/n selectors; G: [n_seg, F] 0/1 broadcast;
    rest: [1, F] indicator of pass-through lanes (>= _REST_START)."""
    n_seg = len(_SEGMENTS)
    s = np.zeros((feat, n_seg), np.float32)
    g = np.zeros((n_seg, feat), np.float32)
    for i, (lo, hi) in enumerate(_SEGMENTS):
        s[lo:hi, i] = 1.0 / float(hi - lo)
        g[i, lo:hi] = 1.0
    rest = np.zeros((1, feat), np.float32)
    rest[0, _REST_START:] = 1.0
    return jnp.asarray(s), jnp.asarray(g), jnp.asarray(rest)


def _critic_kernel(x_ref, s_ref, g_ref, rest_ref,
                   w1_ref, b1_ref, w2_ref, b2_ref,
                   w3_ref, b3_ref, w4_ref, b4_ref, out_ref,
                   *, use_bf16_tanh):
    x = x_ref[...]                                              # [TB, F] f32

    # ---- StateProcessor: per-segment InstanceNorm1d via constant-matrix MXU ops.
    mean = jnp.dot(x, s_ref[...], precision=_HIGHEST,
                   preferred_element_type=jnp.float32)          # [TB, n_seg]
    mean_b = jnp.dot(mean, g_ref[...], precision=_HIGHEST,
                     preferred_element_type=jnp.float32)        # [TB, F], 0 on rest lanes
    centered = x - mean_b                                       # == x on rest lanes
    var = jnp.dot(centered * centered, s_ref[...], precision=_HIGHEST,
                  preferred_element_type=jnp.float32)           # exact two-pass biased var
    inv_std = lax.rsqrt(var + _EPS)                             # [TB, n_seg] (EUP)
    scale = jnp.dot(inv_std, g_ref[...], precision=_HIGHEST,
                    preferred_element_type=jnp.float32) + rest_ref[...]
    feats = centered * scale                                    # normed segments + raw rest

    # ---- value_net: Linear->Tanh x3, final Linear (f32 MXU accumulation).
    if use_bf16_tanh:
        act = lambda z: jnp.tanh(z.astype(jnp.bfloat16)).astype(jnp.float32)
    else:
        act = jnp.tanh
    h = act(jnp.dot(feats, w1_ref[...], preferred_element_type=jnp.float32) + b1_ref[...])
    h = act(jnp.dot(h, w2_ref[...], preferred_element_type=jnp.float32) + b2_ref[...])
    h = act(jnp.dot(h, w3_ref[...], preferred_element_type=jnp.float32) + b3_ref[...])
    out = jnp.dot(h, w4_ref[...], preferred_element_type=jnp.float32) + b4_ref[...]
    # [TB, out_dim=1] store is a masked vst; deliberately NOT padded to 128 lanes
    # (that would 128x the HBM writeback; it is only 4 B/row and not the bottleneck).
    out_ref[...] = out.astype(out_ref.dtype)


def critic_forward(x, params, *, tile_b=2048):
    """x: [B, 1, F] float32 (PyTorch NCL, C==1). Returns [B, output_size]."""
    x2d = x[:, 0, :]                                            # squeeze channel dim
    B, F = x2d.shape
    assert F >= _REST_START, "input_size must be >= 16 for the hard-coded segment layout"
    out_dim = params["w4"].shape[1]

    # Batch tile: multiple of 8 sublanes, capped by the (padded) batch.
    tile_b = int(min(max(tile_b, 8), _round_up(B, 8)))
    tile_b = _round_up(tile_b, 8)
    b_pad = _round_up(B, tile_b)
    if b_pad != B:
        x2d = jnp.pad(x2d, ((0, b_pad - B), (0, 0)))            # zero rows are benign

    s_mat, g_mat, rest = _norm_constants(F)
    use_bf16_tanh = _use_bf16_tanh()

    h1, h2, h3 = params["w1"].shape[1], params["w2"].shape[1], params["w3"].shape[1]
    n_seg = s_mat.shape[1]
    flops = 2 * b_pad * (2 * F * n_seg + 2 * n_seg * F
                         + F * h1 + h1 * h2 + h2 * h3 + h3 * out_dim)
    transcendentals = b_pad * (h1 + h2 + h3 + n_seg)
    param_bytes = sum(int(np.prod(v.shape)) * 4 for v in params.values())
    bytes_accessed = 4 * b_pad * (F + out_dim) + param_bytes

    def const_spec(a):
        return pl.BlockSpec(a.shape, lambda i: (0,) * a.ndim)   # VMEM-resident across grid

    args = (x2d, s_mat, g_mat, rest,
            params["w1"], params["b1"], params["w2"], params["b2"],
            params["w3"], params["b3"], params["w4"], params["b4"])
    in_specs = ([pl.BlockSpec((tile_b, F), lambda i: (i, 0))]
                + [const_spec(a) for a in args[1:]])

    out = pl.pallas_call(
        functools.partial(_critic_kernel, use_bf16_tanh=use_bf16_tanh),
        out_shape=jax.ShapeDtypeStruct((b_pad, out_dim), jnp.float32),
        grid=(b_pad // tile_b,),
        in_specs=in_specs,
        out_specs=pl.BlockSpec((tile_b, out_dim), lambda i: (i, 0)),
        compiler_params=pltpu.CompilerParams(dimension_semantics=("parallel",)),
        cost_estimate=pl.CostEstimate(flops=int(flops),
                                      transcendentals=int(transcendentals),
                                      bytes_accessed=int(bytes_accessed)),
    )(*args)
    return out[:B]


def init_params(key, input_size, output_size):
    """Deterministic synthetic params. W stored [in, out]; biases as [1, out]."""
    dims = [input_size, 64, 48, 36, output_size]
    keys = jax.random.split(key, 8)
    params = {}
    for i in range(4):
        fan_in, fan_out = dims[i], dims[i + 1]
        bound = 1.0 / jnp.sqrt(float(fan_in))
        if i == 3:
            # final layer: orthogonal weight (gain=1), zero bias, like the module
            w = jax.nn.initializers.orthogonal(scale=1.0)(
                keys[2 * i], (fan_in, fan_out), jnp.float32)
            b = jnp.zeros((1, fan_out), jnp.float32)
        else:
            w = jax.random.uniform(keys[2 * i], (fan_in, fan_out), jnp.float32,
                                   minval=-bound, maxval=bound)
            b = jax.random.uniform(keys[2 * i + 1], (1, fan_out), jnp.float32,
                                   minval=-bound, maxval=bound)
        params[f"w{i + 1}"] = w
        params[f"b{i + 1}"] = b
    return params


def reference_forward(x, params):
    """Pure-JAX reference mirroring the PyTorch forward."""
    x2d = x[:, 0, :]
    parts = []
    for lo, hi in _SEGMENTS:
        seg = x2d[:, lo:hi]
        mean = seg.mean(axis=-1, keepdims=True)
        var = ((seg - mean) ** 2).mean(axis=-1, keepdims=True)
        parts.append((seg - mean) / jnp.sqrt(var + _EPS))
    parts.append(x2d[:, _REST_START:])
    feats = jnp.concatenate(parts, axis=-1)
    h = jnp.tanh(feats @ params["w1"] + params["b1"])
    h = jnp.tanh(h @ params["w2"] + params["b2"])
    h = jnp.tanh(h @ params["w3"] + params["b3"])
    return h @ params["w4"] + params["b4"]


if __name__ == "__main__":
    key = jax.random.PRNGKey(0)
    k_x, k_p, k_x2 = jax.random.split(key, 3)

    B, input_size, output_size = 8, 32, 1
    x = jax.random.normal(k_x, (B, 1, input_size), jnp.float32)
    params = init_params(k_p, input_size, output_size)

    out = jax.block_until_ready(critic_forward(x, params))
    ref = reference_forward(x, params)
    # bf16-tanh path (v6e/v7x) trades ~1e-2 absolute accuracy for EUP throughput.
    tol = 5e-2 if _use_bf16_tanh() else 1e-4
    assert out.shape == (B, output_size)
    assert jnp.allclose(out, ref, atol=tol, rtol=tol), (out, ref)

    # Exercise the batch grid (grid > 1, padded batch).
    B2 = 300
    x2 = jax.random.normal(k_x2, (B2, 1, input_size), jnp.float32)
    out2 = jax.block_until_ready(critic_forward(x2, params, tile_b=128))
    ref2 = reference_forward(x2, params)
    assert out2.shape == (B2, output_size)
    assert jnp.allclose(out2, ref2, atol=tol, rtol=tol), (out2, ref2)

    print("KERNEL_OK")
</pallas_src>

<mosaic_0001>
module attributes {stable_mosaic.version = 11 : i64} {
  func.func @_critic_kernel(%arg0: i32, %arg1: memref<8x32xf32, #tpu.memory_space<vmem>>, %arg2: memref<32x4xf32, #tpu.memory_space<vmem>>, %arg3: memref<4x32xf32, #tpu.memory_space<vmem>>, %arg4: memref<1x32xf32, #tpu.memory_space<vmem>>, %arg5: memref<32x64xf32, #tpu.memory_space<vmem>>, %arg6: memref<1x64xf32, #tpu.memory_space<vmem>>, %arg7: memref<64x48xf32, #tpu.memory_space<vmem>>, %arg8: memref<1x48xf32, #tpu.memory_space<vmem>>, %arg9: memref<48x36xf32, #tpu.memory_space<vmem>>, %arg10: memref<1x36xf32, #tpu.memory_space<vmem>>, %arg11: memref<36x1xf32, #tpu.memory_space<vmem>>, %arg12: memref<1x1xf32, #tpu.memory_space<vmem>>, %arg13: memref<8x1xf32, #tpu.memory_space<vmem>>) attributes {dimension_semantics = [#tpu.dimension_semantics<parallel>], iteration_bounds = array<i64: 1>, scalar_prefetch = 0 : i64, scratch_operands = 0 : i64, tpu.core_type = #tpu.core_type<tc>, window_params = [{transform_indices = @transform_0, window_bounds = array<i64: 8, 32>}, {pipeline_mode = #tpu.pipeline_mode<synchronous>, transform_indices = @transform_1, window_bounds = array<i64: 32, 4>}, {pipeline_mode = #tpu.pipeline_mode<synchronous>, transform_indices = @transform_2, window_bounds = array<i64: 4, 32>}, {pipeline_mode = #tpu.pipeline_mode<synchronous>, transform_indices = @transform_3, window_bounds = array<i64: 1, 32>}, {pipeline_mode = #tpu.pipeline_mode<synchronous>, transform_indices = @transform_4, window_bounds = array<i64: 32, 64>}, {pipeline_mode = #tpu.pipeline_mode<synchronous>, transform_indices = @transform_5, window_bounds = array<i64: 1, 64>}, {pipeline_mode = #tpu.pipeline_mode<synchronous>, transform_indices = @transform_6, window_bounds = array<i64: 64, 48>}, {pipeline_mode = #tpu.pipeline_mode<synchronous>, transform_indices = @transform_7, window_bounds = array<i64: 1, 48>}, {pipeline_mode = #tpu.pipeline_mode<synchronous>, transform_indices = @transform_8, window_bounds = array<i64: 48, 36>}, {pipeline_mode = #tpu.pipeline_mode<synchronous>, transform_indices = @transform_9, window_bounds = array<i64: 1, 36>}, {pipeline_mode = #tpu.pipeline_mode<synchronous>, transform_indices = @transform_10, window_bounds = array<i64: 36, 1>}, {pipeline_mode = #tpu.pipeline_mode<synchronous>, transform_indices = @transform_11, window_bounds = array<i64: 1, 1>}, {transform_indices = @transform_12, window_bounds = array<i64: 8, 1>}]} {
    %c0 = arith.constant 0 : index
    %c0_0 = arith.constant 0 : index
    %0 = vector.load %arg1[%c0, %c0_0] : memref<8x32xf32, #tpu.memory_space<vmem>>, vector<8x32xf32>
    %c0_1 = arith.constant 0 : index
    %c0_2 = arith.constant 0 : index
    %1 = vector.load %arg2[%c0_1, %c0_2] : memref<32x4xf32, #tpu.memory_space<vmem>>, vector<32x4xf32>
    %cst = arith.constant dense<0.000000e+00> : vector<8x4xf32>
    %2 = tpu.matmul %0, %1, %cst {dimension_numbers = #tpu.dot_dimension_numbers<[1], [0], [0], [1], [0, 0, 1, 1], [], []>, precision = #tpu.contract_precision<fp32>} : vector<8x32xf32>, vector<32x4xf32>, vector<8x4xf32> -> vector<8x4xf32>
    %c0_3 = arith.constant 0 : index
    %c0_4 = arith.constant 0 : index
    %3 = vector.load %arg3[%c0_3, %c0_4] : memref<4x32xf32, #tpu.memory_space<vmem>>, vector<4x32xf32>
    %cst_5 = arith.constant dense<0.000000e+00> : vector<8x32xf32>
    %4 = tpu.matmul %2, %3, %cst_5 {dimension_numbers = #tpu.dot_dimension_numbers<[1], [0], [0], [1], [0, 0, 1, 1], [], []>, precision = #tpu.contract_precision<fp32>} : vector<8x4xf32>, vector<4x32xf32>, vector<8x32xf32> -> vector<8x32xf32>
    %5 = arith.subf %0, %4 : vector<8x32xf32>
    %6 = arith.mulf %5, %5 : vector<8x32xf32>
    %c0_6 = arith.constant 0 : index
    %c0_7 = arith.constant 0 : index
    %7 = vector.load %arg2[%c0_6, %c0_7] : memref<32x4xf32, #tpu.memory_space<vmem>>, vector<32x4xf32>
    %cst_8 = arith.constant dense<0.000000e+00> : vector<8x4xf32>
    %8 = tpu.matmul %6, %7, %cst_8 {dimension_numbers = #tpu.dot_dimension_numbers<[1], [0], [0], [1], [0, 0, 1, 1], [], []>, precision = #tpu.contract_precision<fp32>} : vector<8x32xf32>, vector<32x4xf32>, vector<8x4xf32> -> vector<8x4xf32>
    %cst_9 = arith.constant 9.99999974E-6 : f32
    %9 = vector.broadcast %cst_9 : f32 to vector<8x4xf32>
    %10 = arith.addf %8, %9 : vector<8x4xf32>
    %11 = math.rsqrt %10 : vector<8x4xf32>
    %c0_10 = arith.constant 0 : index
    %c0_11 = arith.constant 0 : index
    %12 = vector.load %arg3[%c0_10, %c0_11] : memref<4x32xf32, #tpu.memory_space<vmem>>, vector<4x32xf32>
    %cst_12 = arith.constant dense<0.000000e+00> : vector<8x32xf32>
    %13 = tpu.matmul %11, %12, %cst_12 {dimension_numbers = #tpu.dot_dimension_numbers<[1], [0], [0], [1], [0, 0, 1, 1], [], []>, precision = #tpu.contract_precision<fp32>} : vector<8x4xf32>, vector<4x32xf32>, vector<8x32xf32> -> vector<8x32xf32>
    %c0_13 = arith.constant 0 : index
    %c0_14 = arith.constant 0 : index
    %14 = vector.load %arg4[%c0_13, %c0_14] : memref<1x32xf32, #tpu.memory_space<vmem>>, vector<1x32xf32>
    %15 = vector.broadcast %14 : vector<1x32xf32> to vector<8x32xf32>
    %16 = arith.addf %13, %15 : vector<8x32xf32>
    %17 = arith.mulf %5, %16 : vector<8x32xf32>
    %c0_15 = arith.constant 0 : index
    %c0_16 = arith.constant 0 : index
    %18 = vector.load %arg5[%c0_15, %c0_16] : memref<32x64xf32, #tpu.memory_space<vmem>>, vector<32x64xf32>
    %cst_17 = arith.constant dense<0.000000e+00> : vector<8x64xf32>
    %19 = tpu.matmul %17, %18, %cst_17 {dimension_numbers = #tpu.dot_dimension_numbers<[1], [0], [0], [1], [0, 0, 1, 1], [], []>} : vector<8x32xf32>, vector<32x64xf32>, vector<8x64xf32> -> vector<8x64xf32>
    %c0_18 = arith.constant 0 : index
    %c0_19 = arith.constant 0 : index
    %20 = vector.load %arg6[%c0_18, %c0_19] : memref<1x64xf32, #tpu.memory_space<vmem>>, vector<1x64xf32>
    %21 = vector.broadcast %20 : vector<1x64xf32> to vector<8x64xf32>
    %22 = arith.addf %19, %21 : vector<8x64xf32>
    %23 = math.tanh %22 : vector<8x64xf32>
    %c0_20 = arith.constant 0 : index
    %c0_21 = arith.constant 0 : index
    %24 = vector.load %arg7[%c0_20, %c0_21] : memref<64x48xf32, #tpu.memory_space<vmem>>, vector<64x48xf32>
    %cst_22 = arith.constant dense<0.000000e+00> : vector<8x48xf32>
    %25 = tpu.matmul %23, %24, %cst_22 {dimension_numbers = #tpu.dot_dimension_numbers<[1], [0], [0], [1], [0, 0, 1, 1], [], []>} : vector<8x64xf32>, vector<64x48xf32>, vector<8x48xf32> -> vector<8x48xf32>
    %c0_23 = arith.constant 0 : index
    %c0_24 = arith.constant 0 : index
    %26 = vector.load %arg8[%c0_23, %c0_24] : memref<1x48xf32, #tpu.memory_space<vmem>>, vector<1x48xf32>
    %27 = vector.broadcast %26 : vector<1x48xf32> to vector<8x48xf32>
    %28 = arith.addf %25, %27 : vector<8x48xf32>
    %29 = math.tanh %28 : vector<8x48xf32>
    %c0_25 = arith.constant 0 : index
    %c0_26 = arith.constant 0 : index
    %30 = vector.load %arg9[%c0_25, %c0_26] : memref<48x36xf32, #tpu.memory_space<vmem>>, vector<48x36xf32>
    %cst_27 = arith.constant dense<0.000000e+00> : vector<8x36xf32>
    %31 = tpu.matmul %29, %30, %cst_27 {dimension_numbers = #tpu.dot_dimension_numbers<[1], [0], [0], [1], [0, 0, 1, 1], [], []>} : vector<8x48xf32>, vector<48x36xf32>, vector<8x36xf32> -> vector<8x36xf32>
    %c0_28 = arith.constant 0 : index
    %c0_29 = arith.constant 0 : index
    %32 = vector.load %arg10[%c0_28, %c0_29] : memref<1x36xf32, #tpu.memory_space<vmem>>, vector<1x36xf32>
    %33 = vector.broadcast %32 : vector<1x36xf32> to vector<8x36xf32>
    %34 = arith.addf %31, %33 : vector<8x36xf32>
    %35 = math.tanh %34 : vector<8x36xf32>
    %c0_30 = arith.constant 0 : index
    %c0_31 = arith.constant 0 : index
    %36 = vector.load %arg11[%c0_30, %c0_31] : memref<36x1xf32, #tpu.memory_space<vmem>>, vector<36x1xf32>
    %cst_32 = arith.constant dense<0.000000e+00> : vector<8x1xf32>
    %37 = tpu.matmul %35, %36, %cst_32 {dimension_numbers = #tpu.dot_dimension_numbers<[1], [0], [0], [1], [0, 0, 1, 1], [], []>} : vector<8x36xf32>, vector<36x1xf32>, vector<8x1xf32> -> vector<8x1xf32>
    %c0_33 = arith.constant 0 : index
    %c0_34 = arith.constant 0 : index
    %38 = vector.load %arg12[%c0_33, %c0_34] : memref<1x1xf32, #tpu.memory_space<vmem>>, vector<1x1xf32>
    %39 = vector.broadcast %38 : vector<1x1xf32> to vector<8x1xf32>
    %40 = arith.addf %37, %39 : vector<8x1xf32>
    %c0_35 = arith.constant 0 : index
    %c0_36 = arith.constant 0 : index
    %41 = vector.load %arg13[%c0_35, %c0_36] : memref<8x1xf32, #tpu.memory_space<vmem>>, vector<8x1xf32>
    tpu.vector_store %arg13[%c0_35, %c0_36], %40 {strides = array<i32>} : memref<8x1xf32, #tpu.memory_space<vmem>>, vector<8x1xf32>,
    return
  }
  func.func @transform_0(%arg0: i32) -> (i32, i32) {
    %c0_i32 = arith.constant 0 : i32
    %c0_i32_0 = arith.constant 0 : i32
    return %arg0, %c0_i32 : i32, i32
  }
  func.func @transform_1(%arg0: i32) -> (i32, i32) {
    %c0_i32 = arith.constant 0 : i32
    %c0_i32_0 = arith.constant 0 : i32
    %c0_i32_1 = arith.constant 0 : i32
    return %c0_i32, %c0_i32_0 : i32, i32
  }
  func.func @transform_2(%arg0: i32) -> (i32, i32) {
    %c0_i32 = arith.constant 0 : i32
    %c0_i32_0 = arith.constant 0 : i32
    %c0_i32_1 = arith.constant 0 : i32
    return %c0_i32, %c0_i32_0 : i32, i32
  }
  func.func @transform_3(%arg0: i32) -> (i32, i32) {
    %c0_i32 = arith.constant 0 : i32
    %c0_i32_0 = arith.constant 0 : i32
    %c0_i32_1 = arith.constant 0 : i32
    return %c0_i32, %c0_i32_0 : i32, i32
  }
  func.func @transform_4(%arg0: i32) -> (i32, i32) {
    %c0_i32 = arith.constant 0 : i32
    %c0_i32_0 = arith.constant 0 : i32
    %c0_i32_1 = arith.constant 0 : i32
    return %c0_i32, %c0_i32_0 : i32, i32
  }
  func.func @transform_5(%arg0: i32) -> (i32, i32) {
    %c0_i32 = arith.constant 0 : i32
    %c0_i32_0 = arith.constant 0 : i32
    %c0_i32_1 = arith.constant 0 : i32
    return %c0_i32, %c0_i32_0 : i32, i32
  }
  func.func @transform_6(%arg0: i32) -> (i32, i32) {
    %c0_i32 = arith.constant 0 : i32
    %c0_i32_0 = arith.constant 0 : i32
    %c0_i32_1 = arith.constant 0 : i32
    return %c0_i32, %c0_i32_0 : i32, i32
  }
  func.func @transform_7(%arg0: i32) -> (i32, i32) {
    %c0_i32 = arith.constant 0 : i32
    %c0_i32_0 = arith.constant 0 : i32
    %c0_i32_1 = arith.constant 0 : i32
    return %c0_i32, %c0_i32_0 : i32, i32
  }
  func.func @transform_8(%arg0: i32) -> (i32, i32) {
    %c0_i32 = arith.constant 0 : i32
    %c0_i32_0 = arith.constant 0 : i32
    %c0_i32_1 = arith.constant 0 : i32
    return %c0_i32, %c0_i32_0 : i32, i32
  }
  func.func @transform_9(%arg0: i32) -> (i32, i32) {
    %c0_i32 = arith.constant 0 : i32
    %c0_i32_0 = arith.constant 0 : i32
    %c0_i32_1 = arith.constant 0 : i32
    return %c0_i32, %c0_i32_0 : i32, i32
  }
  func.func @transform_10(%arg0: i32) -> (i32, i32) {
    %c0_i32 = arith.constant 0 : i32
    %c0_i32_0 = arith.constant 0 : i32
    %c0_i32_1 = arith.constant 0 : i32
    return %c0_i32, %c0_i32_0 : i32, i32
  }
  func.func @transform_11(%arg0: i32) -> (i32, i32) {
    %c0_i32 = arith.constant 0 : i32
    %c0_i32_0 = arith.constant 0 : i32
    %c0_i32_1 = arith.constant 0 : i32
    return %c0_i32, %c0_i32_0 : i32, i32
  }
  func.func @transform_12(%arg0: i32) -> (i32, i32) {
    %c0_i32 = arith.constant 0 : i32
    %c0_i32_0 = arith.constant 0 : i32
    return %arg0, %c0_i32 : i32, i32
  }
}

</mosaic_0001>

<bundles_post_ra>
// kernel: tpu_custom_call.1
= control target key start
LH: loop header
LB: loop body
LE: loop exit
PB: predicated region body
PF: predicated region fallthrough
CT: control target
= control target key end

     0   :  { %vm48_vm0 = vcmask 261120   ;;  %v2826_v0 = vmov 0.0|0.0   ;;  %vm2827_vm1 = vmmov 0   ;;  %v2828_v4 = vmov 0.0   ;;  %s3179_s1 = inlined_call_operand.vmem [shape: f32[32,4], index: 1, kind: input, shape index: {}]   ;;  %s3180_s0 = inlined_call_operand.vmem [shape: f32[8,32], index: 0, kind: input, shape index: {}]   ;;  %s3181_s2 = inlined_call_operand.vmem [shape: f32[4,32], index: 2, kind: input, shape index: {}]   ;;  %s3182_s4 = inlined_call_operand.vmem [shape: f32[32,64], index: 4, kind: input, shape index: {}]   ;;  %s3183_s6 = inlined_call_operand.vmem [shape: f32[64,48], index: 6, kind: input, shape index: {}]   ;;  %s3184_s3 = inlined_call_operand.vmem [shape: f32[1,32], index: 3, kind: input, shape index: {}]   ;;  %s3185_s5 = inlined_call_operand.vmem [shape: f32[1,64], index: 5, kind: input, shape index: {}]   ;;  %s3186_s8 = inlined_call_operand.vmem [shape: f32[48,36], index: 8, kind: input, shape index: {}]   ;;  %s3187_s7 = inlined_call_operand.vmem [shape: f32[1,48], index: 7, kind: input, shape index: {}]   ;;  %s3188_s10 = inlined_call_operand.vmem [shape: f32[36,1], index: 10, kind: input, shape index: {}]   ;;  %s3189_s11 = inlined_call_operand.<no memory space> [shape: f32[1,1], index: 11, kind: input, shape index: {}]   ;;  %s3190_s9 = inlined_call_operand.vmem [shape: f32[1,36], index: 9, kind: input, shape index: {}]   ;;  %s3191_s12 = inlined_call_operand.vmem [shape: f32[8,1], index: 12, kind: output, shape index: {}]  }
   0x1   :  { %2669 = vmatprep.subr.bf16.mxu0 %v2826_v0  ;;  %v44_v1 = vld [vmem:[%s3179_s1] sm:$0xff]  ;;  %v45_v2 = vld [vmem:[%s3179_s1 + $0x8] sm:$0xff]  ;;  %v46_v3 = vld [vmem:[%s3179_s1 + $0x10] sm:$0xff]  ;;  %2427 = vmatprep.mubr.msk.f32.mxu0 %vm2827_vm1, %v2828_v4  ;;  %vm542_vm2 = vcmask 1043456   ;;  %vm538_vm3 = vcmask 31744   ;;  %vm2040_vm4 = vcmask 523264  }
   0x2   :  { %v53_v5 = vand.u32 4294901760, %v44_v1  ;;  %v56_v6 = vand.u32 4294901760, %v45_v2  ;;  %v47_v7 = vld [vmem:[%s3179_s1 + $0x18] sm:$0xff]  ;;  %v59_v8 = vand.u32 4294901760, %v46_v3  ;;  %v2912_v9 = vld [vmem:[%s3180_s0] sm:$0xff]  ;;  %2485 = vmatprep.subr.mxu1 %v2828_v4  ;;  %2487 = vmatprep.mubr.msk.f32.mxu1 %vm2827_vm1, %v2828_v4  ;;  %vm2128_vm5 = vcmask 392192  }
   0x3   :  { %v62_v10 = vand.u32 4294901760, %v47_v7  ;;  %v50_v11 = vsel %vm48_vm0, %v2912_v9, 0  ;;  %v537_v41 = vld [vmem:[%s3181_s2] sm:$0xf]  ;;  %vm2215_vm6 = vcmask 293888   ;;  %vm2292_vm7 = vcmask 7168  }
   0x4   :  { %v2919_v12 = vpack.c.bf16 %v56_v6, %v53_v5  ;;  %v121_v13 = vand.u32 4294901760, %v50_v11  ;;  %v133_v14 = vsub.f32 %v44_v1, %v53_v5  ;;  %v140_v15 = vsub.f32 %v45_v2, %v56_v6 }
   0x5   :  { %v147_v16 = vsub.f32 %v46_v3, %v59_v8  ;;  %v154_v17 = vsub.f32 %v47_v7, %v62_v10  ;;  %v2922_v18 = vpack.c.bf16 %v62_v10, %v59_v8  ;;  %v544_v42 = vsel %vm542_vm2, %v537_v41, 0 }
   0x6   :  { %2671 = vmatpush3.bf16.msra.mxu0 %v2919_v12  ;;  %v122_v19 = vsub.f32 %v50_v11, %v121_v13  ;;  %v134_v20 = vand.u32 4294901760, %v133_v14  ;;  %v141_v21 = vand.u32 4294901760, %v140_v15  ;;  %v2936_v37 = vpack.c.bf16 %v140_v15, %v133_v14 }
   0x7   :  { %2672 = vmatprep.subr.bf16.mxu0 %v2826_v0  ;;  %v148_v22 = vand.u32 4294901760, %v147_v16  ;;  %v155_v23 = vand.u32 4294901760, %v154_v17  ;;  %v2940_v38 = vpack.c.bf16 %v154_v17, %v147_v16  ;;  %v2975_v43 = vand.u32 4294901760, %v544_v42 }
   0x8   :  { %v123_v24 = vand.u32 4294901760, %v122_v19  ;;  %v135_v25 = vsub.f32 %v133_v14, %v134_v20  ;;  %v142_v26 = vsub.f32 %v140_v15, %v141_v21  ;;  %v2952_v39 = vpack.c.bf16 %v141_v21, %v134_v20  ;;  %v1940_v14 = vld [vmem:[%s3182_s4] sm:$0xff]  ;;  %v1941_v15 = vld [vmem:[%s3182_s4 + $0x8] sm:$0xff] }
   0x9   :  { %v149_v27 = vsub.f32 %v147_v16, %v148_v22  ;;  %v156_v28 = vsub.f32 %v154_v17, %v155_v23  ;;  %v2956_v40 = vpack.c.bf16 %v155_v23, %v148_v22  ;;  %2486 = vmatpush3.msra.mxu1 %v2975_v43  ;;  %v2979_v44 = vsub.f32 %v544_v42, %v2975_v43  ;;  %v1942_v17 = vld [vmem:[%s3182_s4 + $0x10] sm:$0xff]  ;;  %v2025_v20 = vld [vmem:[%s3183_s6] sm:$0xff]  ;;  %v2026_v21 = vld [vmem:[%s3183_s6 + $0x8] sm:$0xff] }
   0xa   :  { %2674 = vmatpush3.bf16.msra.mxu0 %v2922_v18  ;;  %v124_v29 = vsub.f32 %v122_v19, %v123_v24  ;;  %v136_v30 = vand.u32 4294901760, %v135_v25  ;;  %v143_v31 = vand.u32 4294901760, %v142_v26  ;;  %2490 = vmatprep.subr.mxu1 %v2828_v4  ;;  %v2742_v16 = vpack.c.bf16 %v1941_v15, %v1940_v14  ;;  %v2298_v25 = vld [vmem:[%s3184_s3] ss:$0 sm:$0xff] }
   0xb   :  { %2675 = vmatprep.subr.bf16.mxu0 %v2826_v0  ;;  %v150_v32 = vand.u32 4294901760, %v149_v27  ;;  %v157_v33 = vand.u32 4294901760, %v156_v28  ;;  %v2983_v45 = vand.u32 4294901760, %v2979_v44  ;;  %v2748_v22 = vpack.c.bf16 %v2026_v21, %v2025_v20 }
   0xc   :  { %v125_v34 = vand.u32 4294901760, %v124_v29  ;;  %v2927_v35 = vpack.c.bf16 %v143_v31, %v136_v30  ;;  %v2027_v31 = vld [vmem:[%s3183_s6 + $0x10] sm:$0xff] }
   0xd   :  { %v2930_v36 = vpack.c.bf16 %v157_v33, %v150_v32  ;;  %v626_v46 = vsub.f32 %v2979_v44, %v2983_v45  ;;  %v2028_v32 = vld [vmem:[%s3183_s6 + $0x18] sm:$0xff] }
   0xe   :  { %2428 = vmatmul.mubr.f32.vlgmr.msra.gmra.mrb[0].mxu0 %v125_v34  ;;  %v2751_v33 = vpack.c.bf16 %v2028_v32, %v2027_v31  ;;  %v2029_v34 = vld [vmem:[%s3183_s6 + $0x20] sm:$0xff] }
   0xf   :  { %2677 = vmatpush3.bf16.msra.mxu0 %v2927_v35  ;;  %2438 = vmatprep.mubr.msk.f32.mxu0 %vm2827_vm1, %v2828_v4  ;;  %v627_v47 = vand.u32 4294901760, %v626_v46  ;;  %v2116_v46 = vld [vmem:[%s3186_s8 + $0x8] sm:$0xff] }
  0x10   :  { %2678 = vmatprep.subr.bf16.mxu0 %v2826_v0 }
  0x13   :  { %2680 = vmatpush3.bf16.msra.mxu0 %v2930_v36 }
  0x14   :  { %2681 = vmatprep.subr.bf16.mxu0 %v2826_v0 }
  0x16   :  { %2439 = vmatmul.mubr.f32.vlgmr.msra.gmra.mrb[0].mxu0 %v121_v13 }
  0x17   :  { %2683 = vmatpush3.bf16.msra.mxu0 %v2936_v37  ;;  %2449 = vmatprep.mubr.msk.f32.mxu0 %vm2827_vm1, %v2828_v4 }
  0x18   :  { %2684 = vmatprep.subr.bf16.mxu0 %v2826_v0 }
  0x1b   :  { %2686 = vmatpush3.bf16.msra.mxu0 %v2940_v38 }
  0x1c   :  { %2687 = vmatprep.subr.bf16.mxu0 %v2826_v0 }
  0x1e   :  { %2450 = vmatmul.mubr.f32.vlgmr.msra.gmra.mrb[0].mxu0 %v122_v19 }
  0x1f   :  { %2689 = vmatpush3.bf16.msra.mxu0 %v2919_v12  ;;  %2460 = vmatprep.mubr.msk.f32.mxu0 %vm2827_vm1, %v2828_v4 }
  0x20   :  { %2690 = vmatprep.subr.bf16.mxu0 %v2826_v0 }
  0x23   :  { %2692 = vmatpush3.bf16.msra.mxu0 %v2922_v18 }
  0x24   :  { %2693 = vmatprep.subr.bf16.mxu0 %v2826_v0 }
  0x26   :  { %2461 = vmatmul.mubr.f32.vlgmr.msra.gmra.mrb[0].mxu0 %v123_v24 }
  0x27   :  { %2695 = vmatpush3.bf16.msra.mxu0 %v2952_v39  ;;  %2471 = vmatprep.mubr.msk.f32.mxu0 %vm2827_vm1, %v2828_v4 }
  0x28   :  { %2696 = vmatprep.subr.bf16.mxu0 %v2826_v0 }
  0x2b   :  { %2698 = vmatpush3.bf16.msra.mxu0 %v2956_v40 }
  0x2c   :  { %2699 = vmatprep.subr.bf16.mxu0 %v2826_v0 }
  0x2e   :  { %2472 = vmatmul.mubr.f32.vlgmr.msra.gmra.mrb[0].mxu0 %v121_v13 }
  0x2f   :  { %2701 = vmatpush3.bf16.msra.mxu0 %v2919_v12  ;;  %2482 = vmatprep.mubr.msk.f32.mxu0 %vm2827_vm1, %v2828_v4 }
  0x30   :  { %2702 = vmatprep.subr.bf16.mxu0 %v2826_v0 }
  0x33   :  { %2704 = vmatpush3.bf16.msra.mxu0 %v2922_v18 }
  0x34   :  { %2586 = vmatprep.subr.mxu0 %v2828_v4 }
  0x36   :  { %2483 = vmatmul.mubr.f32.vlgmr.msra.gmra.mrb[0].mxu0 %v121_v13 }
  0x37   :  { %2588 = vmatprep.mubr.msk.f32.mxu0 %vm2827_vm1, %v2828_v4  ;;  %2587 = vmatpush3.msra.mxu0 %v627_v47 }
  0x38   :  { %2591 = vmatprep.subr.mxu0 %v2828_v4 }
 0x109   :  { %v533_v48 = vpop.f32.mrb[0].mxu0 }
 0x10a   :  { %v540_v49 = vsel %vm538_vm3, %v533_v48, 0  ;;  %v2484_v50 = vpop.f32.mrb[1].mxu0  ;;  %v2117_v48 = vld [vmem:[%s3186_s8 + $0x10] sm:$0xff] }
 0x10b   :  { %v612_v51 = vand.u32 4294901760, %v540_v49 }
 0x10d   :  { %v613_v52 = vsub.f32 %v540_v49, %v612_v51  ;;  %v2118_v49 = vld [vmem:[%s3186_s8 + $0x18] sm:$0xff] }
 0x10e   :  { %v2763_v50 = vpack.c.bf16 %v2118_v49, %v2117_v48 }
 0x10f   :  { %v614_v53 = vand.u32 4294901760, %v613_v52 }
 0x111   :  { %v615_v54 = vsub.f32 %v613_v52, %v614_v53 }
 0x113   :  { %v616_v55 = vand.u32 4294901760, %v615_v54  ;;  %v2301_v54 = vld [vmem:[%s3187_s7] ss:$0 sm:$0xff] }
 0x115   :  { %2488 = vmatmul.mubr.f32.vlgmr.msra.gmra.mrb[0].mxu1 %v616_v55 }
 0x116   :  { %2491 = vmatpush3.msra.mxu1 %v627_v47  ;;  %2492 = vmatprep.mubr.msk.f32.mxu1 %vm2827_vm1, %v2828_v4 }
 0x117   :  { %2495 = vmatprep.subr.mxu1 %v2828_v4 }
 0x11d   :  { %2493 = vmatmul.mubr.f32.vlgmr.msra.gmra.mrb[0].mxu1 %v612_v51 }
 0x11e   :  { %2496 = vmatpush3.msra.mxu1 %v2979_v44  ;;  %2497 = vmatprep.mubr.msk.f32.mxu1 %vm2827_vm1, %v2828_v4 }
 0x11f   :  { %2500 = vmatprep.subr.mxu1 %v2828_v4 }
 0x125   :  { %2498 = vmatmul.mubr.f32.vlgmr.msra.gmra.mrb[0].mxu1 %v613_v52  ;;  %v2120_v52 = vld [vmem:[%s3186_s8 + $0x28] sm:$0xff] }
 0x126   :  { %2501 = vmatpush3.msra.mxu1 %v2975_v43  ;;  %2502 = vmatprep.mubr.msk.f32.mxu1 %vm2827_vm1, %v2828_v4 }
 0x127   :  { %2505 = vmatprep.subr.mxu1 %v2828_v4 }
 0x12d   :  { %2503 = vmatmul.mubr.f32.vlgmr.msra.gmra.mrb[0].mxu1 %v614_v53 }
 0x12e   :  { %2506 = vmatpush3.msra.mxu1 %v2983_v45  ;;  %2507 = vmatprep.mubr.msk.f32.mxu1 %vm2827_vm1, %v2828_v4 }
 0x12f   :  { %2510 = vmatprep.subr.mxu1 %v2828_v4 }
 0x135   :  { %2508 = vmatmul.mubr.f32.vlgmr.msra.gmra.mrb[0].mxu1 %v612_v51 }
 0x136   :  { %2511 = vmatpush3.msra.mxu1 %v2975_v43  ;;  %2512 = vmatprep.mubr.msk.f32.mxu1 %vm2827_vm1, %v2828_v4 }
 0x137   :  { %2705 = vmatprep.subr.bf16.mxu1 %v2826_v0 }
 0x13d   :  { %2513 = vmatmul.mubr.f32.vlgmr.msra.gmra.mrb[0].mxu1 %v612_v51  ;;  %v2119_v51 = vld [vmem:[%s3186_s8 + $0x20] sm:$0xff] }
 0x13e   :  { %2707 = vmatpush3.bf16.msra.mxu1 %v2919_v12  ;;  %2523 = vmatprep.mubr.msk.f32.mxu1 %vm2827_vm1, %v2828_v4  ;;  %v2766_v53 = vpack.c.bf16 %v2120_v52, %v2119_v51 }
 0x13f   :  { %2708 = vmatprep.subr.bf16.mxu1 %v2826_v0 }
 0x142   :  { %2710 = vmatpush3.bf16.msra.mxu1 %v2922_v18 }
 0x143   :  { %2711 = vmatprep.subr.bf16.mxu1 %v2826_v0 }
 0x210   :  { %v988_v56 = vpop.f32.mrb[0].mxu1 }
 0x211   :  { %v3015_v57 = vsub.f32 %v2912_v9, %v988_v56  ;;  %v2514_v58 = vpop.f32.mrb[1].mxu1 }
 0x213   :  { %v993_v59 = vmul.f32 %v3015_v57, %v3015_v57 }
 0x215   :  { %v995_v60 = vsel %vm48_vm0, %v993_v59, 0  ;;  %v2203_v59 = vld [vmem:[%s3188_s10] sm:$0xff] }
 0x216   :  { %v1066_v61 = vand.u32 4294901760, %v995_v60 }
 0x218   :  { %v1067_v62 = vsub.f32 %v995_v60, %v1066_v61  ;;  %v2204_v60 = vld [vmem:[%s3188_s10 + $0x8] sm:$0xff] }
 0x21a   :  { %v1068_v63 = vand.u32 4294901760, %v1067_v62 }
 0x21c   :  { %v1069_v1 = vsub.f32 %v1067_v62, %v1068_v63 }
 0x21e   :  { %v1070_v2 = vand.u32 4294901760, %v1069_v1 }
 0x220   :  { %2524 = vmatmul.mubr.f32.vlgmr.msra.gmra.mrb[2].mxu1 %v1070_v2  ;;  %v2207_v2 = vld [vmem:[%s3188_s10 + $0x20] sm:$0xf] }
 0x221   :  { %2713 = vmatpush3.bf16.msra.mxu1 %v2927_v35  ;;  %2534 = vmatprep.mubr.msk.f32.mxu1 %vm2827_vm1, %v2828_v4  ;;  %v2030_v35 = vld [vmem:[%s3183_s6 + $0x28] sm:$0xff] }
 0x222   :  { %2714 = vmatprep.subr.bf16.mxu1 %v2826_v0 }
 0x225   :  { %2716 = vmatpush3.bf16.msra.mxu1 %v2930_v36  ;;  %v2754_v36 = vpack.c.bf16 %v2030_v35, %v2029_v34 }
 0x226   :  { %2717 = vmatprep.subr.bf16.mxu1 %v2826_v0 }
 0x228   :  { %2535 = vmatmul.mubr.f32.vlgmr.msra.gmra.mrb[2].mxu1 %v1066_v61 }
 0x229   :  { %2719 = vmatpush3.bf16.msra.mxu1 %v2936_v37  ;;  %2545 = vmatprep.mubr.msk.f32.mxu1 %vm2827_vm1, %v2828_v4  ;;  %v2031_v37 = vld [vmem:[%s3183_s6 + $0x30] sm:$0xff] }
 0x22a   :  { %2720 = vmatprep.subr.bf16.mxu1 %v2826_v0 }
 0x22d   :  { %2722 = vmatpush3.bf16.msra.mxu1 %v2940_v38  ;;  %v2032_v38 = vld [vmem:[%s3183_s6 + $0x38] sm:$0xff] }
 0x22e   :  { %2723 = vmatprep.subr.bf16.mxu1 %v2826_v0 }
 0x230   :  { %2546 = vmatmul.mubr.f32.vlgmr.msra.gmra.mrb[2].mxu1 %v1067_v62  ;;  %v2205_v62 = vld [vmem:[%s3188_s10 + $0x10] sm:$0xff] }
 0x231   :  { %2725 = vmatpush3.bf16.msra.mxu1 %v2919_v12  ;;  %2556 = vmatprep.mubr.msk.f32.mxu1 %vm2827_vm1, %v2828_v4 }
 0x232   :  { %2726 = vmatprep.subr.bf16.mxu1 %v2826_v0 }
 0x235   :  { %2728 = vmatpush3.bf16.msra.mxu1 %v2922_v18 }
 0x236   :  { %2729 = vmatprep.subr.bf16.mxu1 %v2826_v0 }
 0x238   :  { %2557 = vmatmul.mubr.f32.vlgmr.msra.gmra.mrb[2].mxu1 %v1068_v63  ;;  %v2206_v63 = vld [vmem:[%s3188_s10 + $0x18] sm:$0xff] }
 0x239   :  { %2731 = vmatpush3.bf16.msra.mxu1 %v2952_v39  ;;  %2567 = vmatprep.mubr.msk.f32.mxu1 %vm2827_vm1, %v2828_v4  ;;  %v2757_v39 = vpack.c.bf16 %v2032_v38, %v2031_v37  ;;  %v2772_v1 = vpack.c.bf16 %v2206_v63, %v2205_v62 }
 0x23a   :  { %2732 = vmatprep.subr.bf16.mxu1 %v2826_v0 }
 0x23d   :  { %2734 = vmatpush3.bf16.msra.mxu1 %v2956_v40  ;;  %v2299_v40 = vld [vmem:[%s3185_s5] ss:$0 sm:$0xff] }
 0x23e   :  { %2735 = vmatprep.subr.bf16.mxu1 %v2826_v0 }
 0x240   :  { %2568 = vmatmul.mubr.f32.vlgmr.msra.gmra.mrb[2].mxu1 %v1066_v61 }
 0x241   :  { %2737 = vmatpush3.bf16.msra.mxu1 %v2919_v12  ;;  %2578 = vmatprep.mubr.msk.f32.mxu1 %vm2827_vm1, %v2828_v4 }
 0x242   :  { %2738 = vmatprep.subr.bf16.mxu1 %v2826_v0 }
 0x245   :  { %2740 = vmatpush3.bf16.msra.mxu1 %v2922_v18  ;;  %v1943_v18 = vld [vmem:[%s3182_s4 + $0x18] sm:$0xff] }
 0x246   :  { %2581 = vmatprep.subr.mxu1 %v2828_v4  ;;  %v2745_v19 = vpack.c.bf16 %v1943_v18, %v1942_v17 }
 0x248   :  { %2579 = vmatmul.mubr.f32.vlgmr.msra.gmra.mrb[2].mxu1 %v1066_v61  ;;  %v2769_v61 = vpack.c.bf16 %v2204_v60, %v2203_v59 }
 0x249   :  { %2582 = vmatpush3.msra.mxu1 %v2975_v43  ;;  %2583 = vmatprep.mubr.msk.f32.mxu1 %vm2827_vm1, %v2828_v4 }
 0x24a   :  { %2741 = vmatprep.subr.bf16.mxu1 %v2826_v0 }
 0x31b   :  { %v1478_v3 = vpop.f32.mrb[2].mxu1 }
 0x31c   :  { %v2774_v5 = vadd.f32 1e-05, %v1478_v3  ;;  %v2580_v6 = vpop.f32.mrb[3].mxu1  ;;  %v17_v3 = vstv %s3189_s11 }
 0x31d   :  { %18 = vst [vmem:[#allocation2] sm:$0x1] %v17_v3 }
 0x31e   :  { %2818 = vrsqrt.f32 %v2774_v5  ;;  %v2303_v5 = vld [vmem:[%s3190_s9] ss:$0 sm:$0xff] }
 0x328   :  { %v2819_v7 = vpop.eup %2818 }
 0x329   :  { %v1491_v8 = vsel %vm538_vm3, %v2819_v7, 0 }
 0x32a   :  { %v1559_v9 = vand.u32 4294901760, %v1491_v8 }
 0x32c   :  { %v1560_v10 = vsub.f32 %v1491_v8, %v1559_v9  ;;  %2589 = vmatmul.mubr.f32.vlgmr.msra.gmra.mrb[2].mxu0 %v1559_v9  ;;  %v2305_v8 = vld [vmem:[#allocation2] ss:$0 sm:$0xff] }
 0x32d   :  { %2592 = vmatpush3.msra.mxu0 %v2979_v44  ;;  %2593 = vmatprep.mubr.msk.f32.mxu0 %vm2827_vm1, %v2828_v4 }
 0x32e   :  { %v1561_v11 = vand.u32 4294901760, %v1560_v10  ;;  %2596 = vmatprep.subr.mxu0 %v2828_v4 }
 0x330   :  { %v1562_v12 = vsub.f32 %v1560_v10, %v1561_v11 }
 0x332   :  { %v1563_v13 = vand.u32 4294901760, %v1562_v12 }
 0x334   :  { %2584 = vmatmul.mubr.f32.vlgmr.msra.gmra.mrb[4].mxu1 %v1563_v13  ;;  %2594 = vmatmul.mubr.f32.vlgmr.msra.gmra.mrb[2].mxu0 %v1560_v10 }
 0x335   :  { %2597 = vmatpush3.msra.mxu0 %v2975_v43  ;;  %2598 = vmatprep.mubr.msk.f32.mxu0 %vm2827_vm1, %v2828_v4 }
 0x336   :  { %2601 = vmatprep.subr.mxu0 %v2828_v4  ;;  %2619 = vmatprep.mubr.msk.f32.mxu1 %vm2827_vm1, %v2828_v4 }
 0x337   :  { %2743 = vmatpush3.bf16.msra.mxu1 %v2742_v16 }
 0x338   :  { %2744 = vmatprep.subr.bf16.mxu1 %v2826_v0 }
 0x33b   :  { %2746 = vmatpush3.bf16.msra.mxu1 %v2745_v19 }
 0x33c   :  { %2599 = vmatmul.mubr.f32.vlgmr.msra.gmra.mrb[2].mxu0 %v1561_v11  ;;  %2759 = vmatprep.subr.bf16.mxu1 %v2826_v0 }
 0x33d   :  { %2602 = vmatpush3.msra.mxu0 %v2983_v45  ;;  %2603 = vmatprep.mubr.msk.f32.mxu0 %vm2827_vm1, %v2828_v4  ;;  %v2115_v45 = vld [vmem:[%s3186_s8] sm:$0xff] }
 0x33e   :  { %2606 = vmatprep.subr.mxu0 %v2828_v4  ;;  %v2760_v47 = vpack.c.bf16 %v2116_v46, %v2115_v45 }
 0x344   :  { %2604 = vmatmul.mubr.f32.vlgmr.msra.gmra.mrb[2].mxu0 %v1559_v9 }
 0x345   :  { %2607 = vmatpush3.msra.mxu0 %v2975_v43  ;;  %2608 = vmatprep.mubr.msk.f32.mxu0 %vm2827_vm1, %v2828_v4 }
 0x346   :  { %2747 = vmatprep.subr.bf16.mxu0 %v2826_v0 }
 0x34c   :  { %2609 = vmatmul.mubr.f32.vlgmr.msra.gmra.mrb[2].mxu0 %v1559_v9 }
 0x34d   :  { %2638 = vmatprep.mubr.msk.f32.mxu0 %vm2827_vm1, %v2828_v4  ;;  %2749 = vmatpush3.bf16.msra.mxu0 %v2748_v22 }
 0x34e   :  { %2750 = vmatprep.subr.bf16.mxu0 %v2826_v0 }
 0x351   :  { %2752 = vmatpush3.bf16.msra.mxu0 %v2751_v33 }
 0x352   :  { %2753 = vmatprep.subr.bf16.mxu0 %v2826_v0 }
 0x355   :  { %2755 = vmatpush3.bf16.msra.mxu0 %v2754_v36 }
 0x356   :  { %2756 = vmatprep.subr.bf16.mxu0 %v2826_v0 }
 0x359   :  { %2758 = vmatpush3.bf16.msra.mxu0 %v2757_v39 }
 0x35a   :  { %2768 = vmatprep.subr.bf16.mxu0 %v2826_v0 }
 0x407   :  { %v1565_v23 = vpop.f32.mrb[4].mxu1 }
 0x408   :  { %v2585_v24 = vpop.f32.mrb[5].mxu1  ;;  %v1566_v26 = vadd.f32 %v2298_v25, %v1565_v23 }
 0x41f   :  { %v1935_v27 = vpop.f32.mrb[2].mxu0 }
 0x420   :  { %v2776_v28 = vadd.f32 %v1935_v27, %v1566_v26  ;;  %v2610_v29 = vpop.f32.mrb[3].mxu0 }
 0x422   :  { %v1939_v30 = vmul.f32 %v2776_v28, %v3015_v57 }
 0x424   :  { %2620 = vmatmul.mubr.msk.f32.vlgmr.msra.gmra.mrb[6].mxu1 %vm48_vm0, %v1939_v30 }
 0x425   :  { %2653 = vmatprep.mubr.msk.f32.mxu1 %vm2827_vm1, %v2828_v4  ;;  %2761 = vmatpush3.bf16.msra.mxu1 %v2760_v47 }
 0x426   :  { %2762 = vmatprep.subr.bf16.mxu1 %v2826_v0 }
 0x429   :  { %2764 = vmatpush3.bf16.msra.mxu1 %v2763_v50 }
 0x42a   :  { %2765 = vmatprep.subr.bf16.mxu1 %v2826_v0 }
 0x42d   :  { %2767 = vmatpush3.bf16.msra.mxu1 %v2766_v53 }
 0x4f7   :  { %v2020_v41 = vpop.f32.mrb[6].mxu1 }
 0x4f8   :  { %v2021_v42 = vadd.f32 %v2299_v40, %v2020_v41  ;;  %v2621_v43 = vpop.f32.mrb[7].mxu1 }
 0x4fa   :  { %2820 = vtanh.f32 %v2021_v42 }
 0x504   :  { %v2821_v44 = vpop.eup %2820 }
 0x505   :  { %2639 = vmatmul.mubr.msk.f32.vlgmr.msra.gmra.mrb[4].mxu0 %vm2040_vm4, %v2821_v44 }
 0x506   :  { %2666 = vmatprep.mubr.msk.f32.mxu0 %vm2827_vm1, %v2828_v4  ;;  %2770 = vmatpush3.bf16.msra.mxu0 %v2769_v61 }
 0x507   :  { %2771 = vmatprep.subr.bf16.mxu0 %v2826_v0 }
 0x50a   :  { %2773 = vmatpush3.bf16.msra.mxu0 %v2772_v1 }
 0x50b   :  { %2664 = vmatprep.subr.mxu0 %v2828_v4 }
 0x50e   :  { %2665 = vmatpush3.msk.msra.mxu0 %vm542_vm2, %v2207_v2 }
 0x5d8   :  { %v2110_v55 = vpop.f32.mrb[4].mxu0 }
 0x5d9   :  { %v2111_v56 = vadd.f32 %v2301_v54, %v2110_v55  ;;  %v2640_v57 = vpop.f32.mrb[5].mxu0 }
 0x5db   :  { %2822 = vtanh.f32 %v2111_v56 }
 0x5e5   :  { %v2823_v58 = vpop.eup %2822 }
 0x5e6   :  { %2654 = vmatmul.mubr.msk.f32.vlgmr.msra.gmra.mrb[8].mxu1 %vm2128_vm5, %v2823_v58 }
 0x6b9   :  { %v2198_v6 = vpop.f32.mrb[8].mxu1 }
 0x6ba   :  { %v2199_v0 = vadd.f32 %v2303_v5, %v2198_v6  ;;  %v2655_v7 = vpop.f32.mrb[9].mxu1 }
 0x6bc   :  { %2824 = vtanh.f32 %v2199_v0 }
 0x6c6   :  { %v2825_v4 = vpop.eup %2824 }
 0x6c7   :  { %2667 = vmatmul.mubr.msk.f32.vlgmr.msra.gmra.mrb[6].mxu0 %vm2215_vm6, %v2825_v4 }
 0x79a   :  { %v2288_v9 = vpop.f32.mrb[6].mxu0 }
 0x79b   :  { %v2289_v10 = vadd.f32 %v2305_v8, %v2288_v9  ;;  %v2668_v11 = vpop.f32.mrb[7].mxu0 }
 0x79d   :  { %2293 = vst.msk [vmem:[%s3191_s12] sm:$0xff] %vm2292_vm7, %v2289_v10 }

</bundles_post_ra>
